<compile_context>
chip_gen: v5e
topology: v5e:2x2
jax: 0.10.0
libtpu: 0.0.40
codegen_flags: <defaults>
</compile_context>

<pallas_src>
import jax
import jax.numpy as jnp
from jax.experimental import pallas as pl
from jax.experimental.pallas import tpu as pltpu

LANE = 128        # TPU lane width (interior feature padding target)
SUBLANE_BF16 = 16 # bf16 sublane pack (batch-tile rounding)


def _round_up(x: int, m: int) -> int:
    return (x + m - 1) // m * m


def _cdiv(a: int, b: int) -> int:
    return -(-a // b)


# ----------------------------- parameter setup (glue, plain JAX) ------------

def _make_mask(n: int, in_channels: int, out_channels: int, exclusive: bool):
    base = jnp.ones((n, n), dtype=jnp.float32)
    m = (1.0 - jnp.triu(base)) if exclusive else jnp.tril(base)
    m = jnp.concatenate([m] * in_channels, axis=1)    # [n, in_ch * n]
    m = jnp.concatenate([m] * out_channels, axis=0)   # [out_ch * n, in_ch * n]
    return m


def init_params(key, n: int, net_depth: int, net_width: int, bias: bool = True):
    """Reproduce the torch __init__ (shapes + init scheme) and export kernel
    tensors: bf16 weights with the autoregressive mask pre-folded, interior
    dims lane-padded, boundary (HBM-facing) dims kept at their real width."""
    cfgs = [(1, 1 if net_depth == 1 else net_width, True)]
    for _ in range(net_depth - 2):
        cfgs.append((net_width, net_width, False))
    if net_depth >= 2:
        cfgs.append((net_width, 1, False))
    num_layers = len(cfgs)

    ref_layers = []      # f32, unpadded — semantic reference
    kernel_layers = []   # bf16 weights / f32 bias+alpha — kernel inputs
    for i, (ic, oc, excl) in enumerate(cfgs):
        in_f, out_f = ic * n, oc * n
        key, kw, kb = jax.random.split(key, 3)
        bound = 1.0 / float(in_f) ** 0.5
        # nn.Linear default init bound: 1/sqrt(in_f)
        w = jax.random.uniform(kw, (out_f, in_f), jnp.float32, -bound, bound)
        mask = _make_mask(n, ic, oc, excl)
        scale = jnp.sqrt(mask.size / mask.sum())
        # Mask (and its rescale) folded into the weights at export time.  Safe
        # for frozen/inference weights; re-fold after any retraining.
        w = w * mask * scale
        if bias:
            b = jax.random.uniform(kb, (out_f,), jnp.float32, -bound, bound)
        else:
            b = jnp.zeros((out_f,), jnp.float32)
        # PReLU(num_parameters=in_f, init=0.5) precedes every layer except the first.
        alpha = None if i == 0 else jnp.full((1, in_f), 0.5, jnp.float32)

        ref_layers.append(dict(
            wT=jnp.asarray(w.T),            # [in_f, out_f] f32 (mask folded)
            b=b.reshape(1, out_f),
            alpha=alpha,
        ))

        # Kernel export:
        #  * first layer keeps real input width  -> no lane padding of x in HBM,
        #  * last  layer keeps real output width -> no lane padding of x_hat in HBM,
        #  * interior widths padded to 128 lanes with zero rows/cols.
        p_in = in_f if i == 0 else _round_up(in_f, LANE)
        p_out = out_f if i == num_layers - 1 else _round_up(out_f, LANE)
        wT_pad = jnp.zeros((p_in, p_out), jnp.float32).at[:in_f, :out_f].set(w.T)
        b_pad = jnp.zeros((1, p_out), jnp.float32).at[:, :out_f].set(b)
        a_pad = None
        if alpha is not None:
            a_pad = jnp.full((1, p_in), 0.5, jnp.float32).at[:, :in_f].set(alpha[0])
        kernel_layers.append(dict(
            wT=wT_pad.astype(jnp.bfloat16),   # [p_in, p_out] bf16, zero-padded
            b=b_pad,                          # [1, p_out]    f32
            alpha=a_pad,                      # [1, p_in]     f32 or None
        ))

    return dict(n=n, net_depth=net_depth,
                ref_layers=ref_layers, kernel_layers=kernel_layers)


# ----------------------------- Pallas kernel --------------------------------

def _make_net_kernel(num_layers: int, has_alpha):
    """Fused kernel over one batch tile: (PReLU?) -> masked linear, ..., sigmoid."""
    def kernel(*refs):
        out_ref = refs[-1]
        in_refs = refs[:-1]
        x = in_refs[0][...]                                    # [TILE_B, n] bf16
        idx = 1
        for layer in range(num_layers):
            if has_alpha[layer]:
                alpha = in_refs[idx][...]                      # [1, p_in] f32
                idx += 1
                x = jnp.where(x > 0.0, x, alpha * x)           # PReLU (f32 VPU)
            w = in_refs[idx][...]                              # [p_in, p_out] bf16
            b = in_refs[idx + 1][...]                          # [1, p_out]    f32
            idx += 2
            # bf16 operands on the MXU, f32 accumulation; bias add in f32 (VPU).
            x = jnp.dot(x.astype(jnp.bfloat16), w,
                        preferred_element_type=jnp.float32) + b
        out_ref[...] = jax.nn.sigmoid(x).astype(out_ref.dtype)  # EUP + bf16 store
    return kernel


# ----------------------------- wrapper ---------------------------------------

def _choose_batch_tiling(B: int, max_tile_b: int):
    n_tiles = max(_cdiv(B, max_tile_b), 1)
    # v7x megacore: prefer >= 2 grid steps whenever the batch allows it so the
    # "parallel" grid axis actually shards across both TensorCores.
    if n_tiles == 1 and B > SUBLANE_BF16:
        n_tiles = 2
    tile_b = _round_up(_cdiv(B, n_tiles), SUBLANE_BF16)
    b_pad = tile_b * _cdiv(B, tile_b)
    return tile_b, b_pad


def autoregressive_boundary_forward(x, params, max_tile_b: int = 1024):
    """x: [B, 1, n] (or [B, n]) float -> x_hat: [B, 1, n] float32."""
    n = params["n"]
    layers = params["kernel_layers"]
    B = x.shape[0]
    # torch: x.view(B, -1); spins (+/-1) are exact in bf16 and layer 0 has no
    # PReLU, so the bf16 cast happens at the HBM boundary (halves input DMA).
    x2d = x.reshape(B, -1).astype(jnp.bfloat16)

    in_f0 = layers[0]["wT"].shape[0]
    p_out_last = layers[-1]["wT"].shape[1]
    assert x2d.shape[1] == in_f0

    tile_b, b_pad = _choose_batch_tiling(B, max_tile_b)
    if b_pad != B:
        x_in = jnp.zeros((b_pad, in_f0), jnp.bfloat16).at[:B, :].set(x2d)
    else:
        x_in = x2d

    inputs = [x_in]
    in_specs = [pl.BlockSpec((tile_b, in_f0), lambda i: (i, 0))]
    for layer in layers:
        # TODO(synk): these grid-invariant params could use
        # pipeline_mode=pl.Buffered(1) to halve their VMEM footprint at large
        # net_width; left at the default here (negligible at this width).
        if layer["alpha"] is not None:
            inputs.append(layer["alpha"])
            in_specs.append(pl.BlockSpec(layer["alpha"].shape, lambda i: (0, 0)))
        inputs.append(layer["wT"])
        in_specs.append(pl.BlockSpec(layer["wT"].shape, lambda i: (0, 0)))
        inputs.append(layer["b"])
        in_specs.append(pl.BlockSpec(layer["b"].shape, lambda i: (0, 0)))

    param_bytes = sum(int(a.size) * a.dtype.itemsize for a in inputs[1:])
    in_bytes = int(x_in.size) * 2
    out_bytes = b_pad * p_out_last * 2
    flops = 2 * b_pad * sum(l["wT"].shape[0] * l["wT"].shape[1] for l in layers)
    cost = pl.CostEstimate(flops=int(flops),
                           transcendentals=int(b_pad * p_out_last),
                           bytes_accessed=int(in_bytes + out_bytes + param_bytes))

    # VMEM budget: double-buffered I/O tiles + params + f32 intermediates,
    # with 2x headroom; matters mainly on v5e (16 MiB scoped default).
    max_w = max(max(l["wT"].shape) for l in layers)
    vmem_needed = (2 * (tile_b * in_f0 * 2 + tile_b * p_out_last * 2)
                   + 2 * param_bytes
                   + 4 * tile_b * max_w * 4)
    vmem_limit = int(min(max(2 * vmem_needed, 16 * 2**20), 64 * 2**20))

    kernel = _make_net_kernel(len(layers), [l["alpha"] is not None for l in layers])
    out_pad = pl.pallas_call(
        kernel,
        out_shape=jax.ShapeDtypeStruct((b_pad, p_out_last), jnp.bfloat16),
        grid=(b_pad // tile_b,),
        in_specs=in_specs,
        out_specs=pl.BlockSpec((tile_b, p_out_last), lambda i: (i, 0)),
        compiler_params=pltpu.CompilerParams(
            dimension_semantics=("parallel",),
            vmem_limit_bytes=vmem_limit),
        cost_estimate=cost,
    )(*inputs)

    # Slice off batch padding; return f32 to match the torch module dtype.
    return out_pad[:B, :n].astype(jnp.float32).reshape(B, 1, n)


# ----------------------------- pure-JAX reference (for validation) ----------

def _reference_forward(x, params):
    """f32, unpadded, mask-folded weights — matches the torch module forward."""
    B = x.shape[0]
    h = x.reshape(B, -1).astype(jnp.float32)
    for layer in params["ref_layers"]:
        if layer["alpha"] is not None:
            h = jnp.where(h > 0.0, h, layer["alpha"] * h)
        h = h @ layer["wT"] + layer["b"]
    h = jax.nn.sigmoid(h)
    n = params["n"]
    return h.reshape(B, 1, n)


# ----------------------------- main ------------------------------------------

if __name__ == "__main__":
    # small config consistent with the module: n spins, depth-3 net, width 4
    B, n, net_depth, net_width = 2, 16, 3, 4
    key = jax.random.PRNGKey(0)
    key_p, key_x = jax.random.split(key)

    params = init_params(key_p, n=n, net_depth=net_depth,
                         net_width=net_width, bias=True)

    # spins in {-1, +1}, shape [B, 1, n] like the torch module's sample()
    x = (jax.random.bernoulli(key_x, 0.5, (B, 1, n)).astype(jnp.float32) * 2.0 - 1.0)

    x_hat = jax.block_until_ready(autoregressive_boundary_forward(x, params))
    ref = jax.block_until_ready(_reference_forward(x, params))

    assert x_hat.shape == (B, 1, n)
    # bf16 weights/activations at the MXU + bf16 output store vs f32 reference:
    # post-sigmoid error stays well inside this tolerance.
    err = float(jnp.max(jnp.abs(x_hat - ref)))
    assert jnp.allclose(x_hat, ref, atol=2e-2, rtol=2e-2), err

    print("KERNEL_OK")
</pallas_src>

<mosaic_0001>
module attributes {stable_mosaic.version = 11 : i64} {
  func.func @kernel(%arg0: i32, %arg1: memref<16x16xbf16, #tpu.memory_space<vmem>>, %arg2: memref<16x128xbf16, #tpu.memory_space<vmem>>, %arg3: memref<1x128xf32, #tpu.memory_space<vmem>>, %arg4: memref<1x128xf32, #tpu.memory_space<vmem>>, %arg5: memref<128x128xbf16, #tpu.memory_space<vmem>>, %arg6: memref<1x128xf32, #tpu.memory_space<vmem>>, %arg7: memref<1x128xf32, #tpu.memory_space<vmem>>, %arg8: memref<128x16xbf16, #tpu.memory_space<vmem>>, %arg9: memref<1x16xf32, #tpu.memory_space<vmem>>, %arg10: memref<16x16xbf16, #tpu.memory_space<vmem>>) attributes {dimension_semantics = [#tpu.dimension_semantics<parallel>], iteration_bounds = array<i64: 1>, scalar_prefetch = 0 : i64, scratch_operands = 0 : i64, tpu.core_type = #tpu.core_type<tc>, window_params = [{transform_indices = @transform_0, window_bounds = array<i64: 16, 16>}, {pipeline_mode = #tpu.pipeline_mode<synchronous>, transform_indices = @transform_1, window_bounds = array<i64: 16, 128>}, {pipeline_mode = #tpu.pipeline_mode<synchronous>, transform_indices = @transform_2, window_bounds = array<i64: 1, 128>}, {pipeline_mode = #tpu.pipeline_mode<synchronous>, transform_indices = @transform_3, window_bounds = array<i64: 1, 128>}, {pipeline_mode = #tpu.pipeline_mode<synchronous>, transform_indices = @transform_4, window_bounds = array<i64: 128, 128>}, {pipeline_mode = #tpu.pipeline_mode<synchronous>, transform_indices = @transform_5, window_bounds = array<i64: 1, 128>}, {pipeline_mode = #tpu.pipeline_mode<synchronous>, transform_indices = @transform_6, window_bounds = array<i64: 1, 128>}, {pipeline_mode = #tpu.pipeline_mode<synchronous>, transform_indices = @transform_7, window_bounds = array<i64: 128, 16>}, {pipeline_mode = #tpu.pipeline_mode<synchronous>, transform_indices = @transform_8, window_bounds = array<i64: 1, 16>}, {transform_indices = @transform_9, window_bounds = array<i64: 16, 16>}]} {
    %c0 = arith.constant 0 : index
    %c0_0 = arith.constant 0 : index
    %0 = vector.load %arg1[%c0, %c0_0] : memref<16x16xbf16, #tpu.memory_space<vmem>>, vector<16x16xbf16>
    %c0_1 = arith.constant 0 : index
    %c0_2 = arith.constant 0 : index
    %1 = vector.load %arg2[%c0_1, %c0_2] : memref<16x128xbf16, #tpu.memory_space<vmem>>, vector<16x128xbf16>
    %c0_3 = arith.constant 0 : index
    %c0_4 = arith.constant 0 : index
    %2 = vector.load %arg3[%c0_3, %c0_4] : memref<1x128xf32, #tpu.memory_space<vmem>>, vector<1x128xf32>
    %cst = arith.constant dense<0.000000e+00> : vector<16x128xf32>
    %3 = tpu.matmul %0, %1, %cst {dimension_numbers = #tpu.dot_dimension_numbers<[1], [0], [0], [1], [0, 0, 1, 1], [], []>} : vector<16x16xbf16>, vector<16x128xbf16>, vector<16x128xf32> -> vector<16x128xf32>
    %4 = vector.broadcast %2 : vector<1x128xf32> to vector<16x128xf32>
    %5 = arith.addf %3, %4 : vector<16x128xf32>
    %c0_5 = arith.constant 0 : index
    %c0_6 = arith.constant 0 : index
    %6 = vector.load %arg4[%c0_5, %c0_6] : memref<1x128xf32, #tpu.memory_space<vmem>>, vector<1x128xf32>
    %cst_7 = arith.constant 0.000000e+00 : f32
    %7 = vector.broadcast %cst_7 : f32 to vector<16x128xf32>
    %8 = arith.cmpf ogt, %5, %7 : vector<16x128xf32>
    %9 = vector.broadcast %6 : vector<1x128xf32> to vector<16x128xf32>
    %10 = arith.mulf %9, %5 : vector<16x128xf32>
    %11 = arith.select %8, %5, %10 : vector<16x128xi1>, vector<16x128xf32>
    %c0_8 = arith.constant 0 : index
    %c0_9 = arith.constant 0 : index
    %12 = vector.load %arg5[%c0_8, %c0_9] : memref<128x128xbf16, #tpu.memory_space<vmem>>, vector<128x128xbf16>
    %c0_10 = arith.constant 0 : index
    %c0_11 = arith.constant 0 : index
    %13 = vector.load %arg6[%c0_10, %c0_11] : memref<1x128xf32, #tpu.memory_space<vmem>>, vector<1x128xf32>
    %14 = arith.truncf %11 : vector<16x128xf32> to vector<16x128xbf16>
    %cst_12 = arith.constant dense<0.000000e+00> : vector<16x128xf32>
    %15 = tpu.matmul %14, %12, %cst_12 {dimension_numbers = #tpu.dot_dimension_numbers<[1], [0], [0], [1], [0, 0, 1, 1], [], []>} : vector<16x128xbf16>, vector<128x128xbf16>, vector<16x128xf32> -> vector<16x128xf32>
    %16 = vector.broadcast %13 : vector<1x128xf32> to vector<16x128xf32>
    %17 = arith.addf %15, %16 : vector<16x128xf32>
    %c0_13 = arith.constant 0 : index
    %c0_14 = arith.constant 0 : index
    %18 = vector.load %arg7[%c0_13, %c0_14] : memref<1x128xf32, #tpu.memory_space<vmem>>, vector<1x128xf32>
    %cst_15 = arith.constant 0.000000e+00 : f32
    %19 = vector.broadcast %cst_15 : f32 to vector<16x128xf32>
    %20 = arith.cmpf ogt, %17, %19 : vector<16x128xf32>
    %21 = vector.broadcast %18 : vector<1x128xf32> to vector<16x128xf32>
    %22 = arith.mulf %21, %17 : vector<16x128xf32>
    %23 = arith.select %20, %17, %22 : vector<16x128xi1>, vector<16x128xf32>
    %c0_16 = arith.constant 0 : index
    %c0_17 = arith.constant 0 : index
    %24 = vector.load %arg8[%c0_16, %c0_17] : memref<128x16xbf16, #tpu.memory_space<vmem>>, vector<128x16xbf16>
    %c0_18 = arith.constant 0 : index
    %c0_19 = arith.constant 0 : index
    %25 = vector.load %arg9[%c0_18, %c0_19] : memref<1x16xf32, #tpu.memory_space<vmem>>, vector<1x16xf32>
    %26 = arith.truncf %23 : vector<16x128xf32> to vector<16x128xbf16>
    %cst_20 = arith.constant dense<0.000000e+00> : vector<16x16xf32>
    %27 = tpu.matmul %26, %24, %cst_20 {dimension_numbers = #tpu.dot_dimension_numbers<[1], [0], [0], [1], [0, 0, 1, 1], [], []>} : vector<16x128xbf16>, vector<128x16xbf16>, vector<16x16xf32> -> vector<16x16xf32>
    %28 = vector.broadcast %25 : vector<1x16xf32> to vector<16x16xf32>
    %29 = arith.addf %27, %28 : vector<16x16xf32>
    %30 = arith.negf %29 : vector<16x16xf32>
    %31 = math.exp %30 : vector<16x16xf32>
    %cst_21 = arith.constant 1.000000e+00 : f32
    %32 = vector.broadcast %cst_21 : f32 to vector<16x16xf32>
    %33 = arith.addf %32, %31 : vector<16x16xf32>
    %34 = arith.divf %32, %33 : vector<16x16xf32>
    %35 = arith.truncf %34 : vector<16x16xf32> to vector<16x16xbf16>
    %c0_22 = arith.constant 0 : index
    %c0_23 = arith.constant 0 : index
    %36 = vector.load %arg10[%c0_22, %c0_23] : memref<16x16xbf16, #tpu.memory_space<vmem>>, vector<16x16xbf16>
    tpu.vector_store %arg10[%c0_22, %c0_23], %35 {strides = array<i32>} : memref<16x16xbf16, #tpu.memory_space<vmem>>, vector<16x16xbf16>,
    return
  }
  func.func @transform_0(%arg0: i32) -> (i32, i32) {
    %c0_i32 = arith.constant 0 : i32
    %c0_i32_0 = arith.constant 0 : i32
    return %arg0, %c0_i32 : i32, i32
  }
  func.func @transform_1(%arg0: i32) -> (i32, i32) {
    %c0_i32 = arith.constant 0 : i32
    %c0_i32_0 = arith.constant 0 : i32
    %c0_i32_1 = arith.constant 0 : i32
    return %c0_i32, %c0_i32_0 : i32, i32
  }
  func.func @transform_2(%arg0: i32) -> (i32, i32) {
    %c0_i32 = arith.constant 0 : i32
    %c0_i32_0 = arith.constant 0 : i32
    %c0_i32_1 = arith.constant 0 : i32
    return %c0_i32, %c0_i32_0 : i32, i32
  }
  func.func @transform_3(%arg0: i32) -> (i32, i32) {
    %c0_i32 = arith.constant 0 : i32
    %c0_i32_0 = arith.constant 0 : i32
    %c0_i32_1 = arith.constant 0 : i32
    return %c0_i32, %c0_i32_0 : i32, i32
  }
  func.func @transform_4(%arg0: i32) -> (i32, i32) {
    %c0_i32 = arith.constant 0 : i32
    %c0_i32_0 = arith.constant 0 : i32
    %c0_i32_1 = arith.constant 0 : i32
    return %c0_i32, %c0_i32_0 : i32, i32
  }
  func.func @transform_5(%arg0: i32) -> (i32, i32) {
    %c0_i32 = arith.constant 0 : i32
    %c0_i32_0 = arith.constant 0 : i32
    %c0_i32_1 = arith.constant 0 : i32
    return %c0_i32, %c0_i32_0 : i32, i32
  }
  func.func @transform_6(%arg0: i32) -> (i32, i32) {
    %c0_i32 = arith.constant 0 : i32
    %c0_i32_0 = arith.constant 0 : i32
    %c0_i32_1 = arith.constant 0 : i32
    return %c0_i32, %c0_i32_0 : i32, i32
  }
  func.func @transform_7(%arg0: i32) -> (i32, i32) {
    %c0_i32 = arith.constant 0 : i32
    %c0_i32_0 = arith.constant 0 : i32
    %c0_i32_1 = arith.constant 0 : i32
    return %c0_i32, %c0_i32_0 : i32, i32
  }
  func.func @transform_8(%arg0: i32) -> (i32, i32) {
    %c0_i32 = arith.constant 0 : i32
    %c0_i32_0 = arith.constant 0 : i32
    %c0_i32_1 = arith.constant 0 : i32
    return %c0_i32, %c0_i32_0 : i32, i32
  }
  func.func @transform_9(%arg0: i32) -> (i32, i32) {
    %c0_i32 = arith.constant 0 : i32
    %c0_i32_0 = arith.constant 0 : i32
    return %arg0, %c0_i32 : i32, i32
  }
}

</mosaic_0001>

<bundles_post_ra>
// kernel: tpu_custom_call.1
= control target key start
LH: loop header
LB: loop body
LE: loop exit
PB: predicated region body
PF: predicated region fallthrough
CT: control target
= control target key end

     0   :  { %14 = vsyncpa [#allocation3], 0  ;;  %s631_s0 = inlined_call_operand.vmem [shape: bf16[16,16], index: 0, kind: input, shape index: {}]   ;;  %s632_s1 = inlined_call_operand.hbm [shape: bf16[16,128], index: 1, kind: input, shape index: {}]   ;;  %s633_s2 = inlined_call_operand.vmem [shape: f32[1,128], index: 2, kind: input, shape index: {}]   ;;  %s634_s3 = inlined_call_operand.vmem [shape: f32[1,128], index: 3, kind: input, shape index: {}]   ;;  %s635_s4 = inlined_call_operand.vmem [shape: bf16[128,128], index: 4, kind: input, shape index: {}]   ;;  %s636_s5 = inlined_call_operand.vmem [shape: f32[1,128], index: 5, kind: input, shape index: {}]   ;;  %s637_s6 = inlined_call_operand.vmem [shape: f32[1,128], index: 6, kind: input, shape index: {}]   ;;  %s638_s7 = inlined_call_operand.vmem [shape: bf16[128,16], index: 7, kind: input, shape index: {}]   ;;  %s639_s8 = inlined_call_operand.vmem [shape: f32[1,16], index: 8, kind: input, shape index: {}]   ;;  %s640_s9 = inlined_call_operand.hbm [shape: bf16[16,16], index: 9, kind: output, shape index: {}]  }
   0x1   :  { %15 = vsyncpa [#allocation4], 0  ;;  %s22_s11 = sshll.u32 %s632_s1, 4  ;;  %s497_s12 = smov [#allocation2]   ;;  %s23_s11 = int_to_ptr.hbm [resolvable:$true] %s22_s11 }
   0x2   :  { %s24_s13 = sshll.u32 %s497_s12, 4  ;;  %s498_s14 = smov 64   ;;  %s25_s13 = int_to_ptr.vmem [resolvable:$true] %s24_s13 }
   0x3   :  { %s499_s15 = smov 4  }
   0x4   :  { %30 = dma.hbm_to_vmem [thread:$0]  %s23_s11, 128, %s25_s13, [#allocation3], %s498_s14, %s498_s14, %s499_s15  }
   0x5   :  { %493 = dma.done.wait [#allocation3], 128  }
   0x6   :  { %494 = vsyncadd [#allocation3], 4294967168  ;;  %v411_v0 = vld [vmem:[#allocation2] sm:$0xff]  ;;  %v419_v1 = vld [vmem:[%s635_s4 + $0x38] sm:$0xff]  ;;  %vm69_vm0 = vcmask 130048   ;;  %vm313_vm9 = vcmask 125952  }
   0x7   :  { %v410_v2 = vld [vmem:[%s631_s0] sm:$0xff]  ;;  %80 = vmatpush.bf16.msra.mxu0 %v411_v0  ;;  %166 = vmatpush.bf16.msra.mxu1 %v419_v1  ;;  %v418_v3 = vld [vmem:[%s635_s4 + $0x30] sm:$0xff]  ;;  %v417_v4 = vld [vmem:[%s635_s4 + $0x28] sm:$0xff]  ;;  %s322_s13 = sshll.u32 %s640_s9, 4  ;;  %s323_s13 = int_to_ptr.hbm [resolvable:$true] %s322_s13 }
   0x8   :  { %v416_v5 = vld [vmem:[%s635_s4 + $0x20] sm:$0xff]  ;;  %v415_v6 = vld [vmem:[%s635_s4 + $0x18] sm:$0xff]  ;;  %v414_v7 = vld [vmem:[%s635_s4 + $0x10] sm:$0xff] }
   0x9   :  { %v413_v8 = vld [vmem:[%s635_s4 + $0x8] sm:$0xff]  ;;  %v412_v9 = vld [vmem:[%s635_s4] sm:$0xff]  ;;  %v427_v10 = vld [vmem:[%s638_s7 + $0x38] sm:$0xff] }
   0xa   :  { %343 = vmatmul.msk.bf16.vlgmr.msra.gmra.mxu0 %vm69_vm0, %v410_v2  ;;  %259 = vmatpush.bf16.msra.mxu2 %v427_v10  ;;  %v426_v11 = vld [vmem:[%s638_s7 + $0x30] sm:$0xff]  ;;  %v425_v12 = vld [vmem:[%s638_s7 + $0x28] sm:$0xff]  ;;  %v424_v13 = vld [vmem:[%s638_s7 + $0x20] sm:$0xff] }
   0xb   :  { %167 = vmatpush.bf16.msra.mxu1 %v418_v3  ;;  %v432_v15 = vld [vmem:[%s633_s2] ss:$0 sm:$0xff]  ;;  %v423_v25 = vld [vmem:[%s638_s7 + $0x18] sm:$0xff]  ;;  %v422_v26 = vld [vmem:[%s638_s7 + $0x10] sm:$0xff] }
   0xc   :  { %v433_v17 = vld [vmem:[%s634_s3] ss:$0 sm:$0xff]  ;;  %v421_v27 = vld [vmem:[%s638_s7 + $0x8] sm:$0xff] }
   0xd   :  { %v420_v28 = vld [vmem:[%s638_s7] sm:$0xff] }
   0xe   :  { %260 = vmatpush.bf16.msra.mxu2 %v426_v11  ;;  %v434_v30 = vld [vmem:[%s636_s5] ss:$0 sm:$0xff]  ;;  %s500_s5 = smov [#allocation5]  }
   0xf   :  { %168 = vmatpush.bf16.msra.mxu1 %v417_v4  ;;  %v435_v32 = vld [vmem:[%s637_s6] ss:$0 sm:$0xff]  ;;  %s320_s6 = sshll.u32 %s500_s5, 4  ;;  %s321_s6 = int_to_ptr.vmem [resolvable:$true] %s320_s6 }
  0x10   :  { %v436_v40 = vld [vmem:[%s639_s8] ss:$0 sm:$0xff] }
  0x12   :  { %261 = vmatpush.bf16.msra.mxu2 %v425_v12 }
  0x13   :  { %169 = vmatpush.bf16.msra.mxu1 %v416_v5 }
  0x16   :  { %262 = vmatpush.bf16.msra.mxu2 %v424_v13 }
  0x17   :  { %170 = vmatpush.bf16.msra.mxu1 %v415_v6 }
  0x1a   :  { %263 = vmatpush.bf16.msra.mxu2 %v423_v25 }
  0x1b   :  { %171 = vmatpush.bf16.msra.mxu1 %v414_v7 }
  0x1e   :  { %264 = vmatpush.bf16.msra.mxu2 %v422_v26 }
  0x1f   :  { %172 = vmatpush.bf16.msra.mxu1 %v413_v8 }
  0x22   :  { %265 = vmatpush.bf16.msra.mxu2 %v421_v27 }
  0x23   :  { %173 = vmatpush.bf16.msra.mxu1 %v412_v9 }
  0x26   :  { %266 = vmatpush.bf16.msra.mxu2 %v420_v28 }
  0x87   :  { %v82_v14 = vpop.f32.mrf.mxu0 }
  0x88   :  { %v83_v16 = vadd.f32 %v432_v15, %v82_v14 }
  0x8a   :  { %v93_v19 = vmul.f32 %v433_v17, %v83_v16  ;;  %vm88_vm1 = vcmp.gt.f32.partialorder %v83_v16, 0.0 }
  0x8c   :  { %v95_v22 = vsel %vm88_vm1, %v83_v16, %v93_v19 }
  0x8f   :  { %v84_v18 = vpop.f32.mrf.mxu0 }
  0x90   :  { %v85_v20 = vadd.f32 %v432_v15, %v84_v18 }
  0x92   :  { %v94_v21 = vmul.f32 %v433_v17, %v85_v20  ;;  %vm89_vm2 = vcmp.gt.f32.partialorder %v85_v20, 0.0 }
  0x94   :  { %v96_v23 = vsel %vm89_vm2, %v85_v20, %v94_v21 }
  0x95   :  { %v114_v24 = vpack.c.bf16 %v96_v23, %v95_v22 }
  0x97   :  { %174 = vmatmul.bf16.vlgmr.msra.gmra.mxu1 %v114_v24 }
 0x114   :  { %v175_v29 = vpop.f32.mrf.mxu1 }
 0x115   :  { %v176_v31 = vadd.f32 %v434_v30, %v175_v29 }
 0x117   :  { %v186_v34 = vmul.f32 %v435_v32, %v176_v31  ;;  %vm181_vm3 = vcmp.gt.f32.partialorder %v176_v31, 0.0 }
 0x119   :  { %v188_v37 = vsel %vm181_vm3, %v176_v31, %v186_v34 }
 0x11c   :  { %v177_v33 = vpop.f32.mrf.mxu1 }
 0x11d   :  { %v178_v35 = vadd.f32 %v434_v30, %v177_v33 }
 0x11f   :  { %v187_v36 = vmul.f32 %v435_v32, %v178_v35  ;;  %vm182_vm4 = vcmp.gt.f32.partialorder %v178_v35, 0.0 }
 0x121   :  { %v189_v38 = vsel %vm182_vm4, %v178_v35, %v187_v36 }
 0x122   :  { %v207_v39 = vpack.c.bf16 %v189_v38, %v188_v37 }
 0x124   :  { %267 = vmatmul.bf16.vlgmr.msra.gmra.mxu2 %v207_v39 }
 0x1a7   :  { %v268_v41 = vpop.f32.mrf.mxu2 }
 0x1a8   :  { %v269_v42 = vadd.f32 %v436_v40, %v268_v41 }
 0x1aa   :  { %v408_v43 = vmul.f32 -1.442695, %v269_v42 }
 0x1ac   :  { %437 = vpow2.f32 %v408_v43 }
 0x1af   :  { %v270_v44 = vpop.f32.mrf.mxu2 }
 0x1b0   :  { %v271_v45 = vadd.f32 %v436_v40, %v270_v44 }
 0x1b2   :  { %v438_v46 = vpop.eup %437  ;;  %v409_v47 = vmul.f32 -1.442695, %v271_v45 }
 0x1b3   :  { %v279_v48 = vadd.f32 1.0, %v438_v46 }
 0x1b4   :  { %439 = vpow2.f32 %v409_v47 }
 0x1b5   :  { %441 = vrcp.f32 %v279_v48  ;;  %v292_v54 = vand.u32 2147483648, %v279_v48  ;;  %v290_v56 = vand.u32 2147483647, %v279_v48  ;;  %vm286_vm6 = vweird.f32 %v279_v48 }
 0x1b7   :  { %v293_v59 = vor.u32 1.1754944e-38, %v292_v54  ;;  %vm291_vm8 = vcmp.eq.f32.partialorder %v290_v56, 8.507059e+37 }
 0x1ba   :  { %v440_v49 = vpop.eup %439 }
 0x1bb   :  { %v442_v50 = vpop.eup %441  ;;  %v280_v51 = vadd.f32 1.0, %v440_v49 }
 0x1bc   :  { %v282_v52 = vmul.f32 %v442_v50, %v279_v48  ;;  %vm287_vm5 = vweird.f32 %v442_v50 }
 0x1bd   :  { %443 = vrcp.f32 %v280_v51  ;;  %vm288_vm7 = vmor %vm286_vm6, %vm287_vm5  ;;  %v307_v1 = vand.u32 2147483648, %v280_v51  ;;  %v305_v3 = vand.u32 2147483647, %v280_v51  ;;  %vm301_vm11 = vweird.f32 %v280_v51 }
 0x1be   :  { %v283_v53 = vsub.f32 1.0, %v282_v52 }
 0x1bf   :  { %v308_v5 = vor.u32 1.1754944e-38, %v307_v1  ;;  %vm306_vm13 = vcmp.eq.f32.partialorder %v305_v3, 8.507059e+37 }
 0x1c0   :  { %v284_v55 = vmul.f32 %v442_v50, %v283_v53 }
 0x1c2   :  { %v285_v57 = vadd.f32 %v442_v50, %v284_v55 }
 0x1c3   :  { %v444_v58 = vpop.eup %443 }
 0x1c4   :  { %v297_v60 = vmul.f32 %v444_v58, %v280_v51  ;;  %v289_v61 = vsel %vm288_vm7, %v442_v50, %v285_v57  ;;  %vm302_vm10 = vweird.f32 %v444_v58 }
 0x1c5   :  { %v294_v62 = vsel %vm291_vm8, %v293_v59, %v289_v61  ;;  %vm303_vm12 = vmor %vm301_vm11, %vm302_vm10 }
 0x1c6   :  { %v298_v63 = vsub.f32 1.0, %v297_v60  ;;  %v311_v0 = vpack.c.bf16 %v294_v62, %v294_v62 }
 0x1c8   :  { %v299_v2 = vmul.f32 %v444_v58, %v298_v63  ;;  %314 = vst.msk [vmem:[#allocation5] sm:$0xf] %vm313_vm9, %v311_v0 }
 0x1ca   :  { %v300_v4 = vadd.f32 %v444_v58, %v299_v2 }
 0x1cc   :  { %v304_v6 = vsel %vm303_vm12, %v444_v58, %v300_v4 }
 0x1cd   :  { %v309_v7 = vsel %vm306_vm13, %v308_v5, %v304_v6 }
 0x1ce   :  { %v312_v8 = vpack.c.bf16 %v309_v7, %v309_v7 }
 0x1d0   :  { %315 = vst.msk [vmem:[#allocation5 + $0x4] sm:$0xf] %vm313_vm9, %v312_v8 }
 0x1d1   :  { %328 = dma.vmem_to_hbm [thread:$0]  %s321_s6, 128, %s323_s13, [#allocation4], %s498_s14, %s498_s14, %s499_s15  }
 0x1d2   :  { %495 = dma.done.wait [#allocation4], 128  }
 0x1d3   :  { %496 = vsyncadd [#allocation4], 4294967168 }
 0x1d4   :  { %333 = vsyncpa [#allocation3], 1 }
 0x1d5   :  { %334 = vsyncpa [#allocation4], 1 }

</bundles_post_ra>
